<compile_context>
chip_gen: v7x
topology: tpu7x:2x2x1
jax: 0.10.0
libtpu: 0.0.40
codegen_flags: <defaults>
</compile_context>

<pallas_src>
import math

import jax
import jax.numpy as jnp
from jax import lax
from jax.experimental import pallas as pl
from jax.experimental.pallas import tpu as pltpu


def rope_kernel(x_ref, cs_ref, o_ref):
    """Fused interleaved RoPE rotation on a (rows, lanes) tile.

    Lane layout per token (d_k lanes): [r0, i0, r1, i1, ...]
    cs lane layout per token:          [c0, s0, c1, s1, ...]  (cos/sin of pair j)

        out[2j]   = r_j * c_j - i_j * s_j
        out[2j+1] = r_j * s_j + i_j * c_j

    Invariants (do not break):
      * All rotations are along the LANE axis only, so tile rows never mix.
        That is what makes the Pallas-padded garbage rows of a tail grid block
        safe: their writeback is masked.  Do not add sublane-axis rolls or
        reductions here.
      * lanes and d_k are even (asserted in the wrapper), so the wrap-around
        values of the lane rotations are never selected by the parity masks.
    """
    x = x_ref[...].astype(jnp.float32)
    cs = cs_ref[...].astype(jnp.float32)   # may arrive as bf16; math in f32
    lanes = x.shape[-1]

    lane = lax.broadcasted_iota(jnp.int32, x.shape, dimension=1)
    is_even = (lane & 1) == 0

    # Neighbour lanes via NON-NEGATIVE rotations (lanes - 1 == -1 mod lanes).
    # jnp.roll lowers to the same XLU lane rotation as pltpu.roll and avoids
    # the negative-shift restriction.  XLU slots are idle in this mem-bound
    # kernel, so these are effectively free.
    cs_m1 = jnp.roll(cs, 1, axis=1)            # cs[k-1]
    cs_p1 = jnp.roll(cs, lanes - 1, axis=1)    # cs[k+1]
    x_m1 = jnp.roll(x, 1, axis=1)
    x_p1 = jnp.roll(x, lanes - 1, axis=1)

    cos_il = jnp.where(is_even, cs, cs_m1)         # cos_j on both lanes of pair j
    sin_signed = jnp.where(is_even, -cs_p1, cs)    # even lane: -sin_j, odd: +sin_j
    x_swap = jnp.where(is_even, x_p1, x_m1)        # pair partner: (r, i) -> (i, r)

    o_ref[...] = (x * cos_il + x_swap * sin_signed).astype(o_ref.dtype)


def make_rope_tables(theta: float, d_k: int, max_seq_len: int):
    """Deterministic buffer construction, mirroring the PyTorch __init__."""
    freq = 1.0 / theta ** (jnp.arange(0, d_k, 2, dtype=jnp.float32) / d_k)
    pos = jnp.arange(max_seq_len, dtype=jnp.float32)
    freqs = jnp.outer(pos, freq)                   # (max_seq_len, d_k // 2)
    return jnp.cos(freqs), jnp.sin(freqs)


def _choose_fold(n_tokens: int, d_k: int, max_lanes: int):
    """Pick (fold r, padded token count) so lanes = r*d_k is a multiple of 128
    (lane-dense vregs, unmasked full-width stores) and rows >= 8."""
    base = math.lcm(d_k, 128) // d_k       # smallest fold with lanes % 128 == 0
    if base * d_k > max_lanes:
        base = 1                           # d_k too wide to fold lane-densely
    best = None
    r = base
    while r * d_k <= max_lanes:
        if n_tokens % r == 0 and n_tokens // r >= 8:
            best = r                       # largest exact (pad-free) fold
        r += base
    if best is not None:
        return best, n_tokens
    # No exact fold exists: pad a few tokens rather than eating the ~4.5x
    # masked-partial-store cliff of a sub-128 lane dim on every tile.
    rows = max(8, pl.cdiv(n_tokens, base))
    return base, rows * base


def rope_forward(x, token_positions, cos_table, sin_table,
                 *, block_elems=1024 * 1024, max_lanes=1024):
    *batch, seq_len, d_k = x.shape
    assert d_k % 2 == 0, "d_k must be even"
    assert cos_table.shape[-1] * 2 == d_k

    # One fused cos|sin table, lane-interleaved per pair: [c0, s0, c1, s1, ...].
    # Stored in x.dtype when x is sub-32-bit so the gathered stream is as
    # narrow as the activations; the kernel upcasts to f32 for the math.
    cs_dtype = x.dtype if jnp.dtype(x.dtype).itemsize < 4 else jnp.float32
    cs_table = jnp.stack([cos_table, sin_table], axis=-1)
    cs_table = cs_table.reshape(cos_table.shape[0], d_k).astype(cs_dtype)

    pos = jnp.broadcast_to(token_positions, (*batch, seq_len)).reshape(-1)
    x2 = x.reshape(-1, d_k)
    n = x2.shape[0]

    # Fold consecutive tokens into one row so the lane (minor) dim is a large
    # multiple of 128 (dense vregs, unmasked stores); pad tokens when needed.
    r, n_pad = _choose_fold(n, d_k, max_lanes)
    if n_pad != n:
        x2 = jnp.pad(x2, ((0, n_pad - n), (0, 0)))
        pos = jnp.pad(pos, (0, n_pad - n))         # position 0 is always valid

    # TODO(synk): the data-dependent per-token cos/sin row gather stays in JAX
    # glue; Mosaic has no general dynamic row-gather primitive and a per-token
    # in-kernel slice/DMA loop would serialize this memory-bound kernel, so
    # instead the gathered stream is narrowed to x.dtype (opt-2 fallback).
    cs_g = cs_table[pos]                           # (n_pad, d_k) in cs_dtype

    rows, lanes = n_pad // r, r * d_k
    assert lanes % 2 == 0 and d_k % 2 == 0, "roll wrap-around must never be selected"
    x2 = x2.reshape(rows, lanes)
    cs_g = cs_g.reshape(rows, lanes)

    # Rows per block: ~block_elems elements per operand tile (~4 MiB f32).
    # 3 operands x 2 pipeline buffers ~= 24 MiB -> fits v7x's 64 MiB VMEM with
    # headroom; on v5e/v6e (128 MiB) block_elems can be raised to ~2M for very
    # large inputs to shave per-grid-step overhead.
    tm = max(8, (block_elems // lanes) // 8 * 8)
    if tm >= rows:
        tm = rows
        if rows >= 16:
            # Keep >= 2 grid blocks so dimension_semantics=("parallel",) can
            # shard the grid across both TensorCores of a v7x chip.
            tm = ((rows + 1) // 2 + 7) // 8 * 8

    itemsize = jnp.dtype(x.dtype).itemsize
    bytes_accessed = rows * lanes * (2 * itemsize + jnp.dtype(cs_dtype).itemsize)
    cost = pl.CostEstimate(flops=3 * rows * lanes, transcendentals=0,
                           bytes_accessed=bytes_accessed)

    spec = pl.BlockSpec((tm, lanes), lambda i: (i, 0))
    out = pl.pallas_call(
        rope_kernel,
        out_shape=jax.ShapeDtypeStruct((rows, lanes), x.dtype),
        grid=(pl.cdiv(rows, tm),),        # tail block writeback masked by Pallas
        in_specs=[spec, spec],
        out_specs=spec,
        compiler_params=pltpu.CompilerParams(
            dimension_semantics=("parallel",),
            vmem_limit_bytes=48 * 1024 * 1024,   # v7x-safe (64 MiB physical)
        ),
        cost_estimate=cost,
    )(x2, cs_g)

    out = out.reshape(n_pad, d_k)
    if n_pad != n:
        out = out[:n]
    return out.reshape(*batch, seq_len, d_k)


def rope_reference(x, token_positions, cos_table, sin_table):
    """Pure-JAX reference mirroring the PyTorch forward semantics."""
    *batch, seq_len, d_k = x.shape
    xp = x.reshape(*batch, seq_len, d_k // 2, 2)
    xr, xi = xp[..., 0], xp[..., 1]
    c = cos_table[token_positions]
    s = sin_table[token_positions]
    rr = xr * c - xi * s
    ri = xr * s + xi * c
    return jnp.stack([rr, ri], axis=-1).reshape(*batch, seq_len, d_k)


if __name__ == "__main__":
    theta = 10000.0
    d_k = 64
    max_seq_len = 32
    batch = 2
    seq_len = 8

    key = jax.random.PRNGKey(0)
    kx, kp = jax.random.split(key)
    x = jax.random.normal(kx, (batch, seq_len, d_k), dtype=jnp.float32)
    token_positions = jax.random.randint(
        kp, (batch, seq_len), minval=0, maxval=max_seq_len, dtype=jnp.int32)

    cos_table, sin_table = make_rope_tables(theta, d_k, max_seq_len)

    out = rope_forward(x, token_positions, cos_table, sin_table)
    out = jax.block_until_ready(out)

    ref = rope_reference(x, token_positions, cos_table, sin_table)
    assert out.shape == x.shape and out.dtype == x.dtype
    assert jnp.allclose(out, ref, atol=1e-5, rtol=1e-5), "mismatch vs reference"

    print("KERNEL_OK")
</pallas_src>

<mosaic_0001>
module attributes {stable_mosaic.version = 11 : i64} {
  func.func @rope_kernel(%arg0: i32, %arg1: memref<8x128xf32, #tpu.memory_space<vmem>>, %arg2: memref<8x128xf32, #tpu.memory_space<vmem>>, %arg3: memref<8x128xf32, #tpu.memory_space<vmem>>) attributes {dimension_semantics = [#tpu.dimension_semantics<parallel>], iteration_bounds = array<i64: 1>, scalar_prefetch = 0 : i64, scratch_operands = 0 : i64, tpu.core_type = #tpu.core_type<tc>, window_params = [{transform_indices = @transform_0, window_bounds = array<i64: 8, 128>}, {transform_indices = @transform_1, window_bounds = array<i64: 8, 128>}, {transform_indices = @transform_2, window_bounds = array<i64: 8, 128>}]} {
    %c0 = arith.constant 0 : index
    %c0_0 = arith.constant 0 : index
    %0 = vector.load %arg1[%c0, %c0_0] : memref<8x128xf32, #tpu.memory_space<vmem>>, vector<8x128xf32>
    %c0_1 = arith.constant 0 : index
    %c0_2 = arith.constant 0 : index
    %1 = vector.load %arg2[%c0_1, %c0_2] : memref<8x128xf32, #tpu.memory_space<vmem>>, vector<8x128xf32>
    %2 = tpu.iota {dimensions = array<i32: 1>} : vector<8x128xi32>
    %c1_i32 = arith.constant 1 : i32
    %3 = vector.broadcast %c1_i32 : i32 to vector<8x128xi32>
    %4 = arith.andi %2, %3 : vector<8x128xi32>
    %c0_i32 = arith.constant 0 : i32
    %5 = vector.broadcast %c0_i32 : i32 to vector<8x128xi32>
    %6 = arith.cmpi eq, %4, %5 : vector<8x128xi32>
    %7 = vector.extract_strided_slice %1 {offsets = [0, 127], sizes = [8, 1], strides = [1, 1]} : vector<8x128xf32> to vector<8x1xf32>
    %8 = vector.extract_strided_slice %1 {offsets = [0, 0], sizes = [8, 127], strides = [1, 1]} : vector<8x128xf32> to vector<8x127xf32>
    %9 = tpu.concatenate %7, %8 in 1 : vector<8x1xf32>, vector<8x127xf32> -> vector<8x128xf32>
    %10 = vector.extract_strided_slice %1 {offsets = [0, 1], sizes = [8, 127], strides = [1, 1]} : vector<8x128xf32> to vector<8x127xf32>
    %11 = vector.extract_strided_slice %1 {offsets = [0, 0], sizes = [8, 1], strides = [1, 1]} : vector<8x128xf32> to vector<8x1xf32>
    %12 = tpu.concatenate %10, %11 in 1 : vector<8x127xf32>, vector<8x1xf32> -> vector<8x128xf32>
    %13 = vector.extract_strided_slice %0 {offsets = [0, 127], sizes = [8, 1], strides = [1, 1]} : vector<8x128xf32> to vector<8x1xf32>
    %14 = vector.extract_strided_slice %0 {offsets = [0, 0], sizes = [8, 127], strides = [1, 1]} : vector<8x128xf32> to vector<8x127xf32>
    %15 = tpu.concatenate %13, %14 in 1 : vector<8x1xf32>, vector<8x127xf32> -> vector<8x128xf32>
    %16 = vector.extract_strided_slice %0 {offsets = [0, 1], sizes = [8, 127], strides = [1, 1]} : vector<8x128xf32> to vector<8x127xf32>
    %17 = vector.extract_strided_slice %0 {offsets = [0, 0], sizes = [8, 1], strides = [1, 1]} : vector<8x128xf32> to vector<8x1xf32>
    %18 = tpu.concatenate %16, %17 in 1 : vector<8x127xf32>, vector<8x1xf32> -> vector<8x128xf32>
    %19 = arith.select %6, %1, %9 : vector<8x128xi1>, vector<8x128xf32>
    %cst = arith.constant 0.000000e+00 : f32
    %20 = vector.broadcast %cst : f32 to vector<8x128xf32>
    %21 = arith.subf %20, %12 : vector<8x128xf32>
    %22 = arith.select %6, %21, %1 : vector<8x128xi1>, vector<8x128xf32>
    %23 = arith.select %6, %18, %15 : vector<8x128xi1>, vector<8x128xf32>
    %24 = arith.mulf %0, %19 : vector<8x128xf32>
    %25 = arith.mulf %23, %22 : vector<8x128xf32>
    %26 = arith.addf %24, %25 : vector<8x128xf32>
    %c0_3 = arith.constant 0 : index
    %c0_4 = arith.constant 0 : index
    %27 = vector.load %arg3[%c0_3, %c0_4] : memref<8x128xf32, #tpu.memory_space<vmem>>, vector<8x128xf32>
    tpu.vector_store %arg3[%c0_3, %c0_4], %26 {strides = array<i32>} : memref<8x128xf32, #tpu.memory_space<vmem>>, vector<8x128xf32>,
    return
  }
  func.func @transform_0(%arg0: i32) -> (i32, i32) {
    %c0_i32 = arith.constant 0 : i32
    %c0_i32_0 = arith.constant 0 : i32
    return %arg0, %c0_i32 : i32, i32
  }
  func.func @transform_1(%arg0: i32) -> (i32, i32) {
    %c0_i32 = arith.constant 0 : i32
    %c0_i32_0 = arith.constant 0 : i32
    return %arg0, %c0_i32 : i32, i32
  }
  func.func @transform_2(%arg0: i32) -> (i32, i32) {
    %c0_i32 = arith.constant 0 : i32
    %c0_i32_0 = arith.constant 0 : i32
    return %arg0, %c0_i32 : i32, i32
  }
}

</mosaic_0001>

<bundles_post_ra>
// kernel: tpu_custom_call.1
= control target key start
LH: loop header
LB: loop body
LE: loop exit
PB: predicated region body
PF: predicated region fallthrough
CT: control target
= control target key end

     0   :  { %7 = vsyncpa [#allocation3], 0  ;;  %s213_s0 = inlined_call_operand.hbm [shape: f32[8,128], index: 0, kind: input, shape index: {}]   ;;  %s214_s1 = inlined_call_operand.hbm [shape: f32[8,128], index: 1, kind: input, shape index: {}]   ;;  %s215_s2 = inlined_call_operand.hbm [shape: f32[8,128], index: 2, kind: output, shape index: {}]  }
   0x1   :  { %8 = vsyncpa [#allocation6], 0 }
   0x2   :  { %9 = vsyncpa [#allocation4], 0  ;;  %s157_s9 = smov [#allocation2]   ;;  %s158_s11 = smov [#allocation5]  }
   0x3   :  { %s16_s10 = sshll.u32 %s157_s9, 4  ;;  %s26_s12 = sshll.u32 %s158_s11, 4  ;;  %s17_s10 = int_to_ptr.vmem [resolvable:$true] %s16_s10  ;;  %s27_s12 = int_to_ptr.vmem [resolvable:$true] %s26_s12 }
   0x4   :  { %s85_s15 = scalar_lea.hbm %s213_s0, 128 }
   0x5   :  { %p86_p0 = scmp.ne.s32.totalorder %s213_s0, %s85_s15  ;;  %p89_p1 = scmp.lt.u32.totalorder %s85_s15, %s213_s0 }
   0x7   :  { %p91_p2 = pnand %p89_p1, %p86_p0 }
   0x9   :  { %94 = shalt.err (!%p91_p2)
}
   0xa   :  { %s95_s20 = scalar_lea.vmem %s17_s10, 128  ;;  %p100_p4 = scmp.lt.s32.totalorder %s17_s10, %s17_s10 }
   0xb   :  { %p96_p3 = scmp.ne.s32.totalorder %s17_s10, %s95_s20  ;;  %p101_p5 = scmp.lt.s32.totalorder %s95_s20, %s95_s20 }
   0xd   :  { %p102_p6 = por %p101_p5, %p100_p4 }
   0xf   :  { %p103_p7 = pnand %p102_p6, %p96_p3 }
  0x11   :  { %106 = shalt.err (!%p103_p7)
}
  0x12   :  { %19 = dma.hbm_to_vmem [thread:$0]  %s213_s0, 128, %s17_s10, [#allocation3]  }
  0x13   :  { %s107_s25 = scalar_lea.hbm %s214_s1, 128 }
  0x14   :  { %p108_p8 = scmp.ne.s32.totalorder %s214_s1, %s107_s25  ;;  %p111_p9 = scmp.lt.u32.totalorder %s107_s25, %s214_s1 }
  0x16   :  { %p113_p10 = pnand %p111_p9, %p108_p8 }
  0x18   :  { %116 = shalt.err (!%p113_p10)
}
  0x19   :  { %s117_s30 = scalar_lea.vmem %s27_s12, 128  ;;  %p122_p12 = scmp.lt.s32.totalorder %s27_s12, %s27_s12 }
  0x1a   :  { %p118_p11 = scmp.ne.s32.totalorder %s27_s12, %s117_s30  ;;  %p123_p13 = scmp.lt.s32.totalorder %s117_s30, %s117_s30 }
  0x1c   :  { %p124_p0 = por %p123_p13, %p122_p12 }
  0x1e   :  { %p125_p1 = pnand %p124_p0, %p118_p11 }
  0x20   :  { %128 = shalt.err (!%p125_p1)
}
  0x21   :  { %29 = dma.hbm_to_vmem [thread:$0]  %s214_s1, 128, %s27_s12, [#allocation6]  }
  0x22   :  { %151 = dma.done.wait [#allocation3], 128  }
  0x23   :  { %152 = vsyncadd [#allocation3], 4294967168 }
  0x24   :  { %153 = dma.done.wait [#allocation6], 128  }
  0x25   :  { %154 = vsyncadd [#allocation6], 4294967168  ;;  %v37_v0 = vld [vmem:[#allocation5] sm:$0xff]  ;;  %v36_v1 = vld [vmem:[#allocation2] sm:$0xff]  ;;  %s159_s4 = smov 127   ;;  %s160_s5 = smov 1   ;;  %v38_v2 = vlaneseq }
  0x26   :  { %46 = vrot.lane.b32.xlu0 %v37_v0, %s159_s4  ;;  %50 = vrot.lane.b32.xlu1 %v36_v1, %s160_s5  ;;  %s161_s1 = smov [#allocation7]  }
  0x27   :  { %v39_v3 = vand.u32 127, %v38_v2  ;;  %s70_s6 = sshll.u32 %s161_s1, 4  ;;  %s71_s6 = int_to_ptr.vmem [resolvable:$true] %s70_s6 }
  0x28   :  { %s129_s7 = scalar_lea.vmem %s71_s6, 128  ;;  %p134_p3 = scmp.lt.s32.totalorder %s71_s6, %s71_s6 }
  0x29   :  { %v40_v4 = vand.u32 1, %v39_v3  ;;  %p130_p2 = scmp.ne.s32.totalorder %s71_s6, %s129_s7  ;;  %p135_p4 = scmp.lt.s32.totalorder %s129_s7, %s129_s7 }
  0x2a   :  { %43 = vrot.lane.b32.xlu0 %v37_v0, %s160_s5  ;;  %53 = vrot.lane.b32.xlu1 %v36_v1, %s159_s4 }
  0x2b   :  { %vm41_vm0 = vcmp.eq.s32.totalorder %v40_v4, 0  ;;  %p136_p5 = por %p135_p4, %p134_p3 }
  0x2d   :  { %p137_p6 = pnand %p136_p5, %p130_p2 }
  0x98   :  { %v47_v5 = vpop.permute.xlu0 %46  ;;  %v51_v6 = vpop.permute.xlu1 %50 }
  0x99   :  { %v57_v7 = vsub.f32 0.0, %v47_v5 }
  0x9b   :  { %v58_v11 = vsel %vm41_vm0, %v57_v7, %v37_v0 }
  0x9c   :  { %v44_v8 = vpop.permute.xlu0 %43  ;;  %v54_v9 = vpop.permute.xlu1 %53 }
  0x9d   :  { %v56_v10 = vsel %vm41_vm0, %v37_v0, %v44_v8  ;;  %v59_v12 = vsel %vm41_vm0, %v54_v9, %v51_v6 }
  0x9e   :  { %v60_v13 = vmul.f32 %v56_v10, %v36_v1  ;;  %v61_v14 = vmul.f32 %v59_v12, %v58_v11 }
  0xa0   :  { %v62_v15 = vadd.f32 %v61_v14, %v60_v13 }
  0xa2   :  { %63 = vst [vmem:[#allocation7] sm:$0xff] %v62_v15 }
  0xa3   :  { %140 = shalt.err (!%p137_p6)
}
  0xa4   :  { %s141_s10 = scalar_lea.hbm %s215_s2, 128 }
  0xa5   :  { %p142_p7 = scmp.ne.s32.totalorder %s215_s2, %s141_s10  ;;  %p145_p8 = scmp.lt.u32.totalorder %s141_s10, %s215_s2 }
  0xa7   :  { %p147_p9 = pnand %p145_p8, %p142_p7 }
  0xa9   :  { %150 = shalt.err (!%p147_p9)
}
  0xaa   :  { %73 = dma.vmem_to_hbm [thread:$0]  %s71_s6, 128, %s215_s2, [#allocation4]  }
  0xab   :  { %155 = dma.done.wait [#allocation4], 128  }
  0xac   :  { %156 = vsyncadd [#allocation4], 4294967168 }
  0xad   :  { %77 = vsyncpa [#allocation3], 1 }
  0xae   :  { %78 = vsyncpa [#allocation6], 1 }
  0xaf   :  { %79 = vsyncpa [#allocation4], 1 }

</bundles_post_ra>
